<compile_context>
chip_gen: v5e
topology: v5e:2x2
jax: 0.10.0
libtpu: 0.0.40
codegen_flags: <defaults>
</compile_context>

<pallas_src>
import jax
import jax.numpy as jnp
from jax.experimental import pallas as pl
from jax.experimental.pallas import tpu as pltpu


def _round_up(x, m):
    return ((x + m - 1) // m) * m


def _critic_kernel(state_ref, action_ref, w1s_ref, w1a_ref, b1_ref, w2_ref,
                   b2_ref, o_ref):
    """One batch tile, natural (batch-on-sublanes) layout.

    state_ref : (TB, Sd) f32
    action_ref: (TB, Ad) f32
    w1s_ref   : (Sd, H)  f32   W1 rows that multiply the state features
    w1a_ref   : (Ad, H)  f32   W1 rows that multiply the action features
    b1_ref    : (1, H)   f32
    w2_ref    : (H, 1)   f32
    b2_ref    : (1, 1)   f32
    o_ref     : (TB, 1)  f32
    """
    # Layer 1: implicit concat([state, action]) @ W1 as two MXU passes, f32 acc.
    h = jnp.dot(state_ref[...], w1s_ref[...], preferred_element_type=jnp.float32)
    h = h + jnp.dot(action_ref[...], w1a_ref[...], preferred_element_type=jnp.float32)
    # Bias + ReLU on the VPU ((1, H) broadcasts over the batch sublanes).
    h = jnp.maximum(h + b1_ref[...], 0.0)
    # Layer 2: (TB, H) @ (H, 1) + b2.
    out = jnp.dot(h, w2_ref[...], preferred_element_type=jnp.float32) + b2_ref[...]
    o_ref[...] = out.astype(o_ref.dtype)


def single_critic_forward(state, action, params, *, block_batch=4096):
    """state: (B, state_dim), action: (B, action_dim) -> (B, 1) f32."""
    w1 = params["w1"].astype(jnp.float32)          # (Sd + Ad, H)
    b1 = params["b1"].astype(jnp.float32)          # (1, H)
    w2 = params["w2"].astype(jnp.float32)          # (H, 1)
    b2 = params["b2"].astype(jnp.float32)          # (1, 1)

    batch, state_dim = state.shape
    action_dim = action.shape[1]
    hidden = w1.shape[1]

    state = state.astype(jnp.float32)
    action = action.astype(jnp.float32)

    # Batch sits on the sublane axis inside the kernel, so tiles only need to
    # be a multiple of 8 rows; pad the batch up (no-op when already aligned)
    # and slice the result back.
    tb = min(block_batch, _round_up(batch, 8))
    b_pad = _round_up(batch, tb)
    if b_pad != batch:
        state = jnp.pad(state, ((0, b_pad - batch), (0, 0)))
        action = jnp.pad(action, ((0, b_pad - batch), (0, 0)))

    # Split W1 so the concat never materializes.
    w1s = w1[:state_dim]                            # (Sd, H)
    w1a = w1[state_dim:]                            # (Ad, H)
    b1_r = b1.reshape(1, hidden)
    w2_r = w2.reshape(hidden, 1)
    b2_r = b2.reshape(1, 1)

    grid = (b_pad // tb,)

    out = pl.pallas_call(
        _critic_kernel,
        out_shape=jax.ShapeDtypeStruct((b_pad, 1), jnp.float32),
        grid=grid,
        in_specs=[
            # Activations: tiled along the batch axis, double-buffered DMA.
            pl.BlockSpec((tb, state_dim), lambda i: (i, 0)),
            pl.BlockSpec((tb, action_dim), lambda i: (i, 0)),
            # Weights / biases: tiny resident VMEM blocks, fetched once.
            pl.BlockSpec((state_dim, hidden), lambda i: (0, 0)),
            pl.BlockSpec((action_dim, hidden), lambda i: (0, 0)),
            pl.BlockSpec((1, hidden), lambda i: (0, 0)),
            pl.BlockSpec((hidden, 1), lambda i: (0, 0)),
            pl.BlockSpec((1, 1), lambda i: (0, 0)),
        ],
        out_specs=pl.BlockSpec((tb, 1), lambda i: (i, 0)),
        compiler_params=pltpu.CompilerParams(
            dimension_semantics=("parallel",),
        ),
    )(state, action, w1s, w1a, b1_r, w2_r, b2_r)

    return out[:batch]


def init_params(key, state_dim, action_dim, hidden=4, out_dim=1):
    """Deterministic init mimicking torch.nn.Linear default (U(-1/sqrt(fan_in), +))."""
    input_dim = state_dim + action_dim
    k1, k2, k3, k4 = jax.random.split(key, 4)
    lim1 = 1.0 / jnp.sqrt(jnp.float32(input_dim))
    lim2 = 1.0 / jnp.sqrt(jnp.float32(hidden))
    return {
        "w1": jax.random.uniform(k1, (input_dim, hidden), jnp.float32, -lim1, lim1),
        "b1": jax.random.uniform(k2, (1, hidden), jnp.float32, -lim1, lim1),
        "w2": jax.random.uniform(k3, (hidden, out_dim), jnp.float32, -lim2, lim2),
        "b2": jax.random.uniform(k4, (1, out_dim), jnp.float32, -lim2, lim2),
    }


def reference_forward(state, action, params):
    x = jnp.concatenate([state, action], axis=1)
    h = jnp.maximum(x @ params["w1"] + params["b1"], 0.0)
    return h @ params["w2"] + params["b2"]


if __name__ == "__main__":
    # Small shapes consistent with the module's forward.
    batch, state_dim, action_dim, n_agents = 8, 16, 8, 2  # n_agents unused in forward

    key = jax.random.PRNGKey(0)
    kp, ks, ka = jax.random.split(key, 3)
    params = init_params(kp, state_dim, action_dim)
    state = jax.random.normal(ks, (batch, state_dim), jnp.float32)
    action = jax.random.normal(ka, (batch, action_dim), jnp.float32)

    out = single_critic_forward(state, action, params)
    out = jax.block_until_ready(out)

    ref = reference_forward(state, action, params)
    assert out.shape == (batch, 1), out.shape
    assert jnp.allclose(out, ref, atol=1e-3, rtol=1e-3), (out, ref)

    print("KERNEL_OK")
</pallas_src>

<mosaic_0001>
module attributes {stable_mosaic.version = 11 : i64} {
  func.func @_critic_kernel(%arg0: i32, %arg1: memref<8x16xf32, #tpu.memory_space<vmem>>, %arg2: memref<8x8xf32, #tpu.memory_space<vmem>>, %arg3: memref<16x4xf32, #tpu.memory_space<vmem>>, %arg4: memref<8x4xf32, #tpu.memory_space<vmem>>, %arg5: memref<1x4xf32, #tpu.memory_space<vmem>>, %arg6: memref<4x1xf32, #tpu.memory_space<vmem>>, %arg7: memref<1x1xf32, #tpu.memory_space<vmem>>, %arg8: memref<8x1xf32, #tpu.memory_space<vmem>>) attributes {dimension_semantics = [#tpu.dimension_semantics<parallel>], iteration_bounds = array<i64: 1>, scalar_prefetch = 0 : i64, scratch_operands = 0 : i64, tpu.core_type = #tpu.core_type<tc>, window_params = [{transform_indices = @transform_0, window_bounds = array<i64: 8, 16>}, {transform_indices = @transform_1, window_bounds = array<i64: 8, 8>}, {pipeline_mode = #tpu.pipeline_mode<synchronous>, transform_indices = @transform_2, window_bounds = array<i64: 16, 4>}, {pipeline_mode = #tpu.pipeline_mode<synchronous>, transform_indices = @transform_3, window_bounds = array<i64: 8, 4>}, {pipeline_mode = #tpu.pipeline_mode<synchronous>, transform_indices = @transform_4, window_bounds = array<i64: 1, 4>}, {pipeline_mode = #tpu.pipeline_mode<synchronous>, transform_indices = @transform_5, window_bounds = array<i64: 4, 1>}, {pipeline_mode = #tpu.pipeline_mode<synchronous>, transform_indices = @transform_6, window_bounds = array<i64: 1, 1>}, {transform_indices = @transform_7, window_bounds = array<i64: 8, 1>}]} {
    %c0 = arith.constant 0 : index
    %c0_0 = arith.constant 0 : index
    %0 = vector.load %arg1[%c0, %c0_0] : memref<8x16xf32, #tpu.memory_space<vmem>>, vector<8x16xf32>
    %c0_1 = arith.constant 0 : index
    %c0_2 = arith.constant 0 : index
    %1 = vector.load %arg3[%c0_1, %c0_2] : memref<16x4xf32, #tpu.memory_space<vmem>>, vector<16x4xf32>
    %cst = arith.constant dense<0.000000e+00> : vector<8x4xf32>
    %2 = tpu.matmul %0, %1, %cst {dimension_numbers = #tpu.dot_dimension_numbers<[1], [0], [0], [1], [0, 0, 1, 1], [], []>} : vector<8x16xf32>, vector<16x4xf32>, vector<8x4xf32> -> vector<8x4xf32>
    %c0_3 = arith.constant 0 : index
    %c0_4 = arith.constant 0 : index
    %3 = vector.load %arg2[%c0_3, %c0_4] : memref<8x8xf32, #tpu.memory_space<vmem>>, vector<8x8xf32>
    %c0_5 = arith.constant 0 : index
    %c0_6 = arith.constant 0 : index
    %4 = vector.load %arg4[%c0_5, %c0_6] : memref<8x4xf32, #tpu.memory_space<vmem>>, vector<8x4xf32>
    %cst_7 = arith.constant dense<0.000000e+00> : vector<8x4xf32>
    %5 = tpu.matmul %3, %4, %cst_7 {dimension_numbers = #tpu.dot_dimension_numbers<[1], [0], [0], [1], [0, 0, 1, 1], [], []>} : vector<8x8xf32>, vector<8x4xf32>, vector<8x4xf32> -> vector<8x4xf32>
    %6 = arith.addf %2, %5 : vector<8x4xf32>
    %c0_8 = arith.constant 0 : index
    %c0_9 = arith.constant 0 : index
    %7 = vector.load %arg5[%c0_8, %c0_9] : memref<1x4xf32, #tpu.memory_space<vmem>>, vector<1x4xf32>
    %8 = vector.broadcast %7 : vector<1x4xf32> to vector<8x4xf32>
    %9 = arith.addf %6, %8 : vector<8x4xf32>
    %cst_10 = arith.constant 0.000000e+00 : f32
    %10 = vector.broadcast %cst_10 : f32 to vector<8x4xf32>
    %11 = arith.maximumf %9, %10 : vector<8x4xf32>
    %c0_11 = arith.constant 0 : index
    %c0_12 = arith.constant 0 : index
    %12 = vector.load %arg6[%c0_11, %c0_12] : memref<4x1xf32, #tpu.memory_space<vmem>>, vector<4x1xf32>
    %cst_13 = arith.constant dense<0.000000e+00> : vector<8x1xf32>
    %13 = tpu.matmul %11, %12, %cst_13 {dimension_numbers = #tpu.dot_dimension_numbers<[1], [0], [0], [1], [0, 0, 1, 1], [], []>} : vector<8x4xf32>, vector<4x1xf32>, vector<8x1xf32> -> vector<8x1xf32>
    %c0_14 = arith.constant 0 : index
    %c0_15 = arith.constant 0 : index
    %14 = vector.load %arg7[%c0_14, %c0_15] : memref<1x1xf32, #tpu.memory_space<vmem>>, vector<1x1xf32>
    %15 = vector.broadcast %14 : vector<1x1xf32> to vector<8x1xf32>
    %16 = arith.addf %13, %15 : vector<8x1xf32>
    %c0_16 = arith.constant 0 : index
    %c0_17 = arith.constant 0 : index
    %17 = vector.load %arg8[%c0_16, %c0_17] : memref<8x1xf32, #tpu.memory_space<vmem>>, vector<8x1xf32>
    tpu.vector_store %arg8[%c0_16, %c0_17], %16 {strides = array<i32>} : memref<8x1xf32, #tpu.memory_space<vmem>>, vector<8x1xf32>,
    return
  }
  func.func @transform_0(%arg0: i32) -> (i32, i32) {
    %c0_i32 = arith.constant 0 : i32
    %c0_i32_0 = arith.constant 0 : i32
    return %arg0, %c0_i32 : i32, i32
  }
  func.func @transform_1(%arg0: i32) -> (i32, i32) {
    %c0_i32 = arith.constant 0 : i32
    %c0_i32_0 = arith.constant 0 : i32
    return %arg0, %c0_i32 : i32, i32
  }
  func.func @transform_2(%arg0: i32) -> (i32, i32) {
    %c0_i32 = arith.constant 0 : i32
    %c0_i32_0 = arith.constant 0 : i32
    %c0_i32_1 = arith.constant 0 : i32
    return %c0_i32, %c0_i32_0 : i32, i32
  }
  func.func @transform_3(%arg0: i32) -> (i32, i32) {
    %c0_i32 = arith.constant 0 : i32
    %c0_i32_0 = arith.constant 0 : i32
    %c0_i32_1 = arith.constant 0 : i32
    return %c0_i32, %c0_i32_0 : i32, i32
  }
  func.func @transform_4(%arg0: i32) -> (i32, i32) {
    %c0_i32 = arith.constant 0 : i32
    %c0_i32_0 = arith.constant 0 : i32
    %c0_i32_1 = arith.constant 0 : i32
    return %c0_i32, %c0_i32_0 : i32, i32
  }
  func.func @transform_5(%arg0: i32) -> (i32, i32) {
    %c0_i32 = arith.constant 0 : i32
    %c0_i32_0 = arith.constant 0 : i32
    %c0_i32_1 = arith.constant 0 : i32
    return %c0_i32, %c0_i32_0 : i32, i32
  }
  func.func @transform_6(%arg0: i32) -> (i32, i32) {
    %c0_i32 = arith.constant 0 : i32
    %c0_i32_0 = arith.constant 0 : i32
    %c0_i32_1 = arith.constant 0 : i32
    return %c0_i32, %c0_i32_0 : i32, i32
  }
  func.func @transform_7(%arg0: i32) -> (i32, i32) {
    %c0_i32 = arith.constant 0 : i32
    %c0_i32_0 = arith.constant 0 : i32
    return %arg0, %c0_i32 : i32, i32
  }
}

</mosaic_0001>

<bundles_post_ra>
// kernel: tpu_custom_call.1
= control target key start
LH: loop header
LB: loop body
LE: loop exit
PB: predicated region body
PF: predicated region fallthrough
CT: control target
= control target key end

     0   :  { %vm33_vm0 = vcmask 64512   ;;  %vm57_vm1 = vcmask 130048   ;;  %vm96_vm2 = vcmask 1043456   ;;  %vm92_vm3 = vcmask 31744   ;;  %s199_s2 = inlined_call_operand.vmem [shape: f32[16,4], index: 2, kind: input, shape index: {}]   ;;  %s200_s3 = inlined_call_operand.vmem [shape: f32[8,4], index: 3, kind: input, shape index: {}]   ;;  %s201_s1 = inlined_call_operand.vmem [shape: f32[8,8], index: 1, kind: input, shape index: {}]   ;;  %s202_s0 = inlined_call_operand.vmem [shape: f32[8,16], index: 0, kind: input, shape index: {}]   ;;  %s203_s4 = inlined_call_operand.vmem [shape: f32[1,4], index: 4, kind: input, shape index: {}]   ;;  %s204_s5 = inlined_call_operand.vmem [shape: f32[4,1], index: 5, kind: input, shape index: {}]   ;;  %s205_s6 = inlined_call_operand.<no memory space> [shape: f32[1,1], index: 6, kind: input, shape index: {}]   ;;  %s206_s7 = inlined_call_operand.vmem [shape: f32[8,1], index: 7, kind: output, shape index: {}]  }
   0x1   :  { %v30_v0 = vld [vmem:[%s199_s2 + $0x8] sm:$0xff]  ;;  %v32_v1 = vld [vmem:[%s200_s3] sm:$0xff]  ;;  %v12_v6 = vstv %s205_s6  ;;  %vm120_vm4 = vcmask 7168  }
   0x2   :  { %v29_v2 = vld [vmem:[%s199_s2] sm:$0xff]  ;;  %75 = vmatpush.msra.mxu1 %v30_v0  ;;  %52 = vmatpush.msra.mxu0 %v32_v1  ;;  %13 = vst [vmem:[#allocation2] sm:$0x1] %v12_v6 }
   0x3   :  { %v31_v3 = vld [vmem:[%s201_s1] sm:$0xff] }
   0x4   :  { %v28_v4 = vld [vmem:[%s202_s0] sm:$0xff]  ;;  %126 = vmatmul.msk.f32.vlgmr.msra.gmra.mxu0 %vm33_vm0, %v31_v3  ;;  %76 = vmatpush.msra.mxu1 %v29_v2 }
   0x5   :  { %127 = vmatmul.msk.f32.vlgmr.msra.gmra.mxu1 %vm57_vm1, %v28_v4  ;;  %v87_v5 = vld [vmem:[%s204_s5] sm:$0xf] }
   0x6   :  { %128 = vmatpush.msk.msra.mxu2 %vm96_vm2, %v87_v5  ;;  %v130_v8 = vld [vmem:[%s203_s4] ss:$0 sm:$0xff] }
   0x9   :  { %v131_v13 = vld [vmem:[#allocation2] ss:$0 sm:$0xff] }
  0x81   :  { %v54_v7 = vpop.f32.mrf.mxu0 }
  0x82   :  { %v78_v9 = vpop.f32.mrf.mxu1 }
  0x83   :  { %v79_v10 = vadd.f32 %v78_v9, %v54_v7 }
  0x85   :  { %v85_v11 = vadd.f32 %v130_v8, %v79_v10 }
  0x87   :  { %v86_v12 = vmax.f32 %v85_v11, 0.0 }
  0x89   :  { %129 = vmatmul.msk.f32.vlgmr.msra.gmra.mxu2 %vm92_vm3, %v86_v12 }
 0x10c   :  { %v117_v14 = vpop.f32.mrf.mxu2 }
 0x10d   :  { %v118_v15 = vadd.f32 %v131_v13, %v117_v14 }
 0x10f   :  { %121 = vst.msk [vmem:[%s206_s7] sm:$0xff] %vm120_vm4, %v118_v15 }

</bundles_post_ra>
